<compile_context>
chip_gen: v5e
topology: v5e:2x2
jax: 0.10.0
libtpu: 0.0.40
codegen_flags: <defaults>
</compile_context>

<pallas_src>
import functools

import jax
import jax.numpy as jnp
from jax import lax
from jax.experimental import pallas as pl
from jax.experimental.pallas import tpu as pltpu


def _vmem_capacity_bytes() -> int:
    """Physical VMEM per core, with a conservative fallback (v7x per-TC size)."""
    try:
        cap = int(getattr(pltpu.get_tpu_info(), "vmem_capacity_bytes", 0))
        if cap > 0:
            return cap
    except Exception:
        pass
    return 64 * 1024 * 1024


def _ortho_loss_partial_kernel(y_ref, out_ref, *, lamb: float,
                               diag_from_gram: bool, mm_precision):
    # y: (BB, R, C) in the input's native dtype; Gram contracts the lane axis.
    y = y_ref[...]
    g = lax.dot_general(
        y, y,
        dimension_numbers=(((2,), (2,)), ((0,), (0,))),
        preferred_element_type=jnp.float32,
        precision=mm_precision)                       # (BB, R, R) f32 accumulate

    r = g.shape[-1]
    row = lax.broadcasted_iota(jnp.int32, (r, r), 0)
    col = lax.broadcasted_iota(jnp.int32, (r, r), 1)
    eye = (row == col).astype(jnp.float32)            # (R, R) identity mask
    gd = g * eye                                      # diagonal-only copy of g

    s1 = jnp.sum(gd)                                  # trace(m) (trace identity)
    s3 = jnp.sum(g * g)                               # ||m||_F^2 == ||g||_F^2

    if diag_from_gram:
        # D <= K: g == m (padded), so diag(g) are exactly the m_bii.
        s2 = jnp.sum(gd * gd)
    else:
        # K < D: y = x^T, so m_bii = sum over sublanes of y[:, :, i]^2.
        rowsq = jnp.sum(jnp.square(y.astype(jnp.float32)), axis=1)   # (BB, C)
        s2 = jnp.sum(rowsq * rowsq)

    lamb_f = jnp.float32(lamb)
    partial = -2.0 * s1 + (1.0 - lamb_f) * s2 + lamb_f * s3

    # Lane-dense unmasked store of the scalar partial for this batch chunk.
    out_ref[...] = jnp.full(out_ref.shape, partial, dtype=jnp.float32)


def orthogonal_matrix_loss_bt(x: jax.Array, lamb: float = 0.1,
                              block_b: int | None = None,
                              mm_precision=None) -> jax.Array:
    """Pallas implementation of OrthogonalMatrixLoss_BT.forward."""
    B, D, K = x.shape
    if mm_precision is None and x.dtype == jnp.float32:
        mm_precision = lax.Precision.HIGHEST

    # Orient so the Gram is built on the smaller side AND contracts the lane
    # (last) axis; the (single) transpose happens once in HBM, not per batch.
    diag_from_gram = D <= K
    y = x if diag_from_gram else jnp.transpose(x, (0, 2, 1))
    _, R, C = y.shape

    # Pad sublane dim to x8, lane dim to x128: unmasked vld, full MXU tiles.
    # Zero rows/cols contribute exactly 0 to s1, s2 and s3.
    Rp = -(-R // 8) * 8
    Cp = -(-C // 128) * 128
    if (Rp, Cp) != (R, C):
        y = jnp.pad(y, ((0, 0), (0, Rp - R), (0, Cp - C)))

    itemsize = jnp.dtype(y.dtype).itemsize
    gram_bytes = Rp * Rp * 4
    # Per-batch VMEM: double-buffered input block + f32 Gram and its temps
    # (g, g*g, g*eye, (g*eye)^2), plus the f32 rowsq temp on the K<D branch.
    per_batch = 2 * Rp * Cp * itemsize + 4 * gram_bytes
    if not diag_from_gram:
        per_batch += Rp * Cp * 4
    fixed = 256 * 1024            # out double-buffer, semaphores, misc slack

    vmem_cap = _vmem_capacity_bytes()
    if block_b is None:
        # Accounting budget: half of (per-core VMEM, capped at 64 MiB) so the
        # sizing stays valid on v7x's 64 MiB/TC while still being ~16x larger
        # slabs than a fixed 2 MiB budget on v5e/v6e.
        budget = min(vmem_cap, 64 * 1024 * 1024) // 2
        block_b = max(1, (budget - fixed) // per_batch)
        block_b = min(block_b, B)
        if B >= 2:
            # Keep >= 2 chunks so the "parallel" axis can feed both TCs (v7x).
            block_b = min(block_b, -(-B // 2))
    block_b = int(max(1, min(block_b, B)))
    # TODO(synk): add a K-reduction ("arbitrary") grid axis with a resident
    # f32 Gram accumulator for shapes where even one (1, Rp, Cp) slab plus its
    # temporaries exceeds scoped VMEM (threshold ~2x lower on v7x).

    num_chunks = -(-B // block_b)
    pad_b = num_chunks * block_b - B
    if pad_b:
        # Zero-padded batches contribute exactly 0 to every partial sum.
        y = jnp.pad(y, ((0, pad_b), (0, 0), (0, 0)))

    need = block_b * per_batch + fixed
    vmem_limit = int(min(vmem_cap, max(need + (8 << 20), 32 << 20)))

    kernel = functools.partial(_ortho_loss_partial_kernel, lamb=float(lamb),
                               diag_from_gram=diag_from_gram,
                               mm_precision=mm_precision)

    total_b = num_chunks * block_b
    cost = pl.CostEstimate(
        flops=2 * total_b * Rp * Rp * Cp + 6 * total_b * Rp * Rp,
        transcendentals=0,
        bytes_accessed=total_b * Rp * Cp * itemsize + num_chunks * 8 * 128 * 4,
    )

    partials = pl.pallas_call(
        kernel,
        out_shape=jax.ShapeDtypeStruct((num_chunks, 8, 128), jnp.float32),
        grid_spec=pltpu.PrefetchScalarGridSpec(
            num_scalar_prefetch=0,
            grid=(num_chunks,),
            in_specs=[pl.BlockSpec((block_b, Rp, Cp), lambda i: (i, 0, 0))],
            out_specs=pl.BlockSpec((1, 8, 128), lambda i: (i, 0, 0)),
        ),
        compiler_params=pltpu.CompilerParams(
            dimension_semantics=("parallel",),   # independent chunks -> megacore
            vmem_limit_bytes=vmem_limit,
        ),
        cost_estimate=cost,
    )(y)

    total = jnp.sum(partials[:, 0, 0])
    return (jnp.float32(B * D) + total) / jnp.float32(B)


def _reference_loss(x: jax.Array, lamb: float = 0.1) -> jax.Array:
    """Pure-JAX reference mirroring the PyTorch forward exactly."""
    B = x.shape[0]
    prec = lax.Precision.HIGHEST if x.dtype == jnp.float32 else None
    m = jnp.einsum("bik,bjk->bij", x, x, precision=prec).astype(jnp.float32)
    m_sq = m * m
    diag_m = jnp.diagonal(m, axis1=1, axis2=2)        # (B, D)
    diag_sq = jnp.diagonal(m_sq, axis1=1, axis2=2)    # (B, D)
    diag_sum = jnp.sum(1.0 - 2.0 * diag_m + diag_sq)
    off_diag_sum = jnp.sum(m_sq) - jnp.sum(diag_sq)
    return (diag_sum + lamb * off_diag_sum) / B


if __name__ == "__main__":
    key = jax.random.PRNGKey(0)
    B, D, K = 2, 8, 32  # small shapes: batch=2, d=8 rows, k=32 feature dim
    x = jax.random.normal(key, (B, D, K), dtype=jnp.float32)

    loss = orthogonal_matrix_loss_bt(x, lamb=0.1)
    loss = jax.block_until_ready(loss)

    ref = jax.block_until_ready(_reference_loss(x, lamb=0.1))
    assert jnp.allclose(loss, ref, rtol=1e-5, atol=1e-5), (loss, ref)

    print("KERNEL_OK")
</pallas_src>

<mosaic_0001>
module attributes {stable_mosaic.version = 11 : i64} {
  func.func @_ortho_loss_partial_kernel(%arg0: i32, %arg1: memref<1x8x128xf32, #tpu.memory_space<vmem>>, %arg2: memref<1x8x128xf32, #tpu.memory_space<vmem>>) attributes {dimension_semantics = [#tpu.dimension_semantics<parallel>], iteration_bounds = array<i64: 2>, scalar_prefetch = 0 : i64, scratch_operands = 0 : i64, tpu.core_type = #tpu.core_type<tc>, window_params = [{transform_indices = @transform_0, window_bounds = array<i64: 1, 8, 128>}, {transform_indices = @transform_1, window_bounds = array<i64: 1, 8, 128>}]} {
    %c0 = arith.constant 0 : index
    %c0_0 = arith.constant 0 : index
    %c0_1 = arith.constant 0 : index
    %0 = vector.load %arg1[%c0, %c0_0, %c0_1] : memref<1x8x128xf32, #tpu.memory_space<vmem>>, vector<1x8x128xf32>
    %cst = arith.constant dense<0.000000e+00> : vector<1x8x8xf32>
    %1 = tpu.matmul %0, %0, %cst {dimension_numbers = #tpu.dot_dimension_numbers<[2], [2], [1], [1], [0, 0, 0, 1, 1, 1], [0], [0]>, precision = #tpu.contract_precision<fp32>} : vector<1x8x128xf32>, vector<1x8x128xf32>, vector<1x8x8xf32> -> vector<1x8x8xf32>
    %2 = tpu.iota {dimensions = array<i32: 0>} : vector<8x8xi32>
    %3 = tpu.iota {dimensions = array<i32: 1>} : vector<8x8xi32>
    %4 = arith.cmpi eq, %2, %3 : vector<8x8xi32>
    %5 = arith.extui %4 : vector<8x8xi1> to vector<8x8xi32>
    %6 = arith.sitofp %5 : vector<8x8xi32> to vector<8x8xf32>
    %7 = vector.shape_cast %6 : vector<8x8xf32> to vector<1x8x8xf32>
    %8 = arith.mulf %1, %7 : vector<1x8x8xf32>
    %9 = vector.shape_cast %8 : vector<1x8x8xf32> to vector<1x1x8x8xf32>
    %cst_2 = arith.constant dense<0.000000e+00> : vector<1xf32>
    %10 = vector.multi_reduction <add>, %9, %cst_2 [1, 2, 3] : vector<1x1x8x8xf32> to vector<1xf32>
    %11 = vector.shape_cast %10 : vector<1xf32> to vector<1x1x1x1xf32>
    %12 = vector.extract %11[0, 0, 0, 0] : f32 from vector<1x1x1x1xf32>
    %13 = arith.mulf %1, %1 : vector<1x8x8xf32>
    %14 = vector.shape_cast %13 : vector<1x8x8xf32> to vector<1x1x8x8xf32>
    %cst_3 = arith.constant dense<0.000000e+00> : vector<1xf32>
    %15 = vector.multi_reduction <add>, %14, %cst_3 [1, 2, 3] : vector<1x1x8x8xf32> to vector<1xf32>
    %16 = vector.shape_cast %15 : vector<1xf32> to vector<1x1x1x1xf32>
    %17 = vector.extract %16[0, 0, 0, 0] : f32 from vector<1x1x1x1xf32>
    %18 = arith.mulf %8, %8 : vector<1x8x8xf32>
    %19 = vector.shape_cast %18 : vector<1x8x8xf32> to vector<1x1x8x8xf32>
    %cst_4 = arith.constant dense<0.000000e+00> : vector<1xf32>
    %20 = vector.multi_reduction <add>, %19, %cst_4 [1, 2, 3] : vector<1x1x8x8xf32> to vector<1xf32>
    %21 = vector.shape_cast %20 : vector<1xf32> to vector<1x1x1x1xf32>
    %22 = vector.extract %21[0, 0, 0, 0] : f32 from vector<1x1x1x1xf32>
    %cst_5 = arith.constant -2.000000e+00 : f32
    %23 = arith.mulf %cst_5, %12 : f32
    %cst_6 = arith.constant 1.000000e+00 : f32
    %cst_7 = arith.constant 1.000000e-01 : f32
    %24 = arith.subf %cst_6, %cst_7 : f32
    %25 = arith.mulf %24, %22 : f32
    %26 = arith.addf %23, %25 : f32
    %cst_8 = arith.constant 1.000000e-01 : f32
    %27 = arith.mulf %cst_8, %17 : f32
    %28 = arith.addf %26, %27 : f32
    %29 = vector.broadcast %28 : f32 to vector<1x8x128xf32>
    %c0_9 = arith.constant 0 : index
    %c0_10 = arith.constant 0 : index
    %c0_11 = arith.constant 0 : index
    %30 = vector.load %arg2[%c0_9, %c0_10, %c0_11] : memref<1x8x128xf32, #tpu.memory_space<vmem>>, vector<1x8x128xf32>
    tpu.vector_store %arg2[%c0_9, %c0_10, %c0_11], %29 {strides = array<i32>} : memref<1x8x128xf32, #tpu.memory_space<vmem>>, vector<1x8x128xf32>,
    return
  }
  func.func @transform_0(%arg0: i32) -> (i32, i32, i32) {
    %c0_i32 = arith.constant 0 : i32
    %c0_i32_0 = arith.constant 0 : i32
    %c0_i32_1 = arith.constant 0 : i32
    return %arg0, %c0_i32, %c0_i32_0 : i32, i32, i32
  }
  func.func @transform_1(%arg0: i32) -> (i32, i32, i32) {
    %c0_i32 = arith.constant 0 : i32
    %c0_i32_0 = arith.constant 0 : i32
    %c0_i32_1 = arith.constant 0 : i32
    return %arg0, %c0_i32, %c0_i32_0 : i32, i32, i32
  }
}

</mosaic_0001>

<bundles_post_ra>
// kernel: tpu_custom_call.1
= control target key start
LH: loop header
LB: loop body
LE: loop exit
PB: predicated region body
PF: predicated region fallthrough
CT: control target
= control target key end

     0   :  { %6 = vsyncpa [#allocation3], 0  ;;  %s721_s0 = inlined_call_operand.hbm [shape: f32[2,8,128], index: 0, kind: input, shape index: {}]   ;;  %s722_s1 = inlined_call_operand.hbm [shape: f32[2,8,128], index: 1, kind: output, shape index: {}]  }
   0x1   :  { %8 = vsyncpa [#allocation3 + $0x1], 0 }
   0x2   :  { %9 = vsyncpa [#allocation4], 0 }
   0x3   :  { %11 = vsyncpa [#allocation4 + $0x1], 0  ;;  %s590_s6 = smov 0   ;;  %s592_s7 = smov 0  }
   0x4   :  { %s594_s8 = smov 0   ;;  %s596_s9 = smov 0  }
   0x5 LB: > { %s611_s10 = sadd.s32 4294967295, %s577_s9   ;;  %s415_s11 = sadd.s32 4294967294, %s577_s9   ;;  %s577_s9 = sphi %s596_s9, %s732_s9   ;;  %s573_s8 = sphi %s594_s8, %s731_s8   ;;  %s569_s7 = sphi %s592_s7, %s730_s7   ;;  %s565_s6 = sphi %s590_s6, %s729_s6  }
   0x6   : > { %s615_s12 = sadd.s32 1, %s577_s9   ;;  %s24_s13 = sadd.s32 1, %s573_s8 }
   0x7   : > { %s21_s14 = ssub.s32 %s577_s9, %s615_s12  ;;  %p31_p0 = scmp.ne.s32.totalorder %s573_s8, %s569_s7 }
   0x8   : > { %p22_p1 = scmp.eq.s32.totalorder %s21_s14, 0  ;;  %p32_p2 = scmp.eq.s32.totalorder %s577_s9, 0 }
   0x9   : > { %p37_p3 = scmp.ne.s32.totalorder %s569_s7, %s565_s6  ;;  %p38_p4 = scmp.eq.s32.totalorder %s611_s10, 0 }
   0xa   : > { %s627_s15 = scalar_select %p22_p1, %s573_s8, %s24_s13  }
   0xb   : > { %p629_p5 = por %p32_p2, %p31_p0  ;;  %p633_p6 = por %p38_p4, %p37_p3 }
   0xc   : > { %p61_p7 = scmp.eq.s32.totalorder %s611_s10, 1  ;;  %p67_p8 = scmp.eq.s32.totalorder %s415_s11, 1 }
   0xd   : > { %p446_p10 = scmp.lt.s32.totalorder %s577_s9, 2  ;;  %s87_s20 = sand.u32 1, %s573_s8  }
   0xe   : > { %p640_p11 = por %p61_p7, %p31_p0  ;;  %p644_p12 = por %p67_p8, %p37_p3 }
   0xf   : > { %s419_s21 = sshll.u32 %s577_s9, 3  ;;  %s418_s22 = sshll.u32 %s87_s20, 3 }
  0x10   : > { %s95_s25 = scalar_lea.hbm %s721_s0, %s419_s21  ;;  %s91_s27 = scalar_lea.vmem [#allocation2], %s418_s22 }
  0x11   : > { %s97_s26 = sshll.u32 %s95_s25, 4  ;;  %s99_s28 = sshll.u32 %s91_s27, 4  ;;  %s98_s26 = int_to_ptr.hbm [resolvable:$true] %s97_s26  ;;  %s100_s28 = int_to_ptr.vmem [resolvable:$true] %s99_s28 }
  0x12   : > { %p655_p13 = pnand %p446_p10, %p629_p5  ;;  %p420_p0 = scmp.ge.s32.totalorder %s577_s9, 1 }
  0x13   : > { %p104_p1 = scmp.lt.s32.totalorder %s577_s9, 3  ;;  %s88_s30 = scalar_lea.sflag [#allocation3], %s87_s20 }
  0x14   : > { %s481_s2 = sshra.s32 %s98_s26, 4  ;;  %p485_p3 = pneg %p655_p13  ;;  %s482_s2 = int_to_ptr.hbm [resolvable:$true] %s481_s2 }
  0x15   : > { %s483_s3 = scalar_lea.hbm %s482_s2, 8  ;;  %s488_s11 = scalar_lea.hbm %s721_s0, 16 }
  0x16   : > { %p484_p2 = scmp.ne.s32.totalorder %s482_s2, %s483_s3  ;;  %p489_p5 = scmp.lt.s32.totalorder %s482_s2, %s721_s0 }
  0x17   : > { %p490_p8 = scmp.lt.s32.totalorder %s488_s11, %s483_s3 }
  0x18   : > { %p486_p4 = pnand %p485_p3, %p484_p2 }
  0x19   : > { %p491_p10 = por %p490_p8, %p489_p5 }
  0x1a   : > { %p487_p7 = pneg %p486_p4 }
  0x1c   : > { %p492_p9 = pnand %p491_p10, %p487_p7 }
  0x1e   : > { %495 = shalt.err (!%p492_p9)
}
  0x1f   : > { %441 = dma.hbm_to_vmem [thread:$0]  (!%p655_p13), %s98_s26, 128, %s100_s28, %s88_s30  }
  0x20   : > { %p105_p2 = pnand %p420_p0, %p104_p1 }
  0x21   : > { %s676_s16 = sand.u32 (!%p105_p2), 1, %s569_s7  }
  0x22   : > { %108 = sbr.rel (%p105_p2) target bundleno = 390 (0x186), region = 24  ;;  %s421_s20 = sshll.u32 (!%p105_p2), %s676_s16, 3 }
  0x23   : > { %s111_s21 = scalar_lea.sflag (!%p105_p2), [#allocation3], %s676_s16  ;;  %s114_s22 = scalar_lea.vmem (!%p105_p2), [#allocation2], %s421_s20 }
  0x27   : > { %556 = dma.done.wait (%p633_p6), %s111_s21, 128  }
  0x28   : > { %558 = vsyncadd (%p633_p6), %s111_s21, 4294967168  ;;  %v134_v0 = vld [vmem:[%s114_s22] sm:$0xff]  ;;  %v281_v7 = vlaneseq  ;;  %v579_v19 = vmov 0.0   ;;  %vm289_vm1 = vcmask 64512   ;;  %s425_s17 = sshll.u32 %s611_s10, 3  ;;  %s133_s2 = scalar_lea.vmem [#allocation5], %s421_s20 }
  0x29   : > { %v150_v1 = vand.u32 4294901760, %v134_v0  ;;  %s340_s27 = scalar_lea.hbm %s722_s1, %s425_s17  ;;  %s342_s3 = sshll.u32 %s133_s2, 4  ;;  %s343_s3 = int_to_ptr.vmem [resolvable:$true] %s342_s3 }
  0x2a   : > { %v282_v11 = vshrl.u32 %v281_v7, 7  ;;  %v284_v12 = vand.u32 127, %v281_v7  ;;  %s344_s4 = sshll.u32 %s340_s27, 4  ;;  %s330_s10 = scalar_lea.sflag [#allocation4], %s676_s16  ;;  %s345_s4 = int_to_ptr.hbm [resolvable:$true] %s344_s4 }
  0x2b   : > { %v153_v2 = vsub.f32 %v134_v0, %v150_v1  ;;  %151 = vmatpush.xpose.msra.mxu0 %v150_v1  ;;  %227 = vmatpush.xpose.msra.mxu3 %v150_v1  ;;  %s525_s14 = sshra.s32 %s345_s4, 4  ;;  %s531_s20 = scalar_lea.hbm %s722_s1, 16  ;;  %s526_s14 = int_to_ptr.hbm [resolvable:$true] %s525_s14 }
  0x2c   : > { %vm285_vm0 = vcmp.eq.s32.totalorder %v282_v11, %v284_v12  ;;  %s527_s21 = scalar_lea.hbm %s526_s14, 8  ;;  %p532_p0 = scmp.lt.s32.totalorder %s526_s14, %s722_s1 }
  0x2d   : > { %204 = vmatpush.xpose.msra.mxu2 %v153_v2  ;;  %v154_v3 = vand.u32 4294901760, %v153_v2  ;;  %v423_v20 = vsel %vm285_vm0, 1.0, %v579_v19  ;;  %p528_p6 = scmp.ne.s32.totalorder %s526_s14, %s527_s21  ;;  %p533_p1 = scmp.lt.s32.totalorder %s531_s20, %s527_s21 }
  0x2f   : > { %v155_v4 = vsub.f32 %v153_v2, %v154_v3  ;;  %231 = vmatmul.f32.vlgmr.msra.gmra.mxu3 %v154_v3  ;;  %253 = vmatpush.xpose.msrb.mxu0 %v154_v3  ;;  %p529_p9 = pnand %p528_p6, %p640_p11  ;;  %p534_p3 = por %p533_p1, %p532_p0 }
  0x30   : > { %207 = vmatmul.f32.vlgmr.msra.gmra.mxu2 %v153_v2 }
  0x31   : > { %v156_v5 = vand.u32 4294901760, %v155_v4  ;;  %p530_p13 = pneg %p529_p9 }
  0x33   : > { %181 = vmatpush.xpose.msra.mxu1 %v156_v5  ;;  %157 = vmatmul.f32.vlgmr.msra.gmra.mxu0 %v156_v5  ;;  %p535_p4 = pnand %p534_p3, %p530_p13 }
  0x36   : > { %183 = vmatmul.f32.vlgmr.msra.gmra.mxu1 %v150_v1 }
  0x37   : > { %275 = vmatpush.xpose.msrb.mxu1 %v150_v1 }
  0x3b   : > { %255 = vmatmul.f32.vlgmr.msrb.gmra.mxu0 %v150_v1 }
  0x3e   : > { %277 = vmatmul.f32.vlgmr.msrb.gmra.mxu1 %v150_v1 }
  0xb0   : > { %v158_v6 = vpop.f32.mrf.mxu0 }
  0xb2   : > { %v232_v13 = vpop.f32.mrf.mxu3 }
  0xb3   : > { %v184_v8 = vpop.f32.mrf.mxu1  ;;  %v208_v9 = vpop.f32.mrf.mxu2 }
  0xb4   : > { %v185_v10 = vadd.f32 %v184_v8, %v158_v6 }
  0xb6   : > { %v209_v14 = vadd.f32 %v208_v9, %v185_v10 }
  0xb8   : > { %v233_v15 = vadd.f32 %v232_v13, %v209_v14  ;;  %v256_v16 = vpop.f32.mrf.mxu0 }
  0xba   : > { %v257_v17 = vadd.f32 %v256_v16, %v233_v15 }
  0xbb   : > { %v278_v18 = vpop.f32.mrf.mxu1 }
  0xbc   : > { %v279_v21 = vadd.f32 %v278_v18, %v257_v17 }
  0xbe   : > { %v288_v22 = vmul.f32 %v423_v20, %v279_v21  ;;  %v300_v26 = vmul.f32 %v279_v21, %v279_v21 }
  0xc0   : > { %v290_v23 = vsel %vm289_vm1, %v288_v22, 0.0  ;;  %v311_v24 = vmul.f32 %v288_v22, %v288_v22  ;;  %v301_v27 = vsel %vm289_vm1, %v300_v26, 0.0 }
  0xc1   : > { %291 = vadd.xlane.f32.xlu0 %v290_v23 }
  0xc2   : > { %v312_v25 = vsel %vm289_vm1, %v311_v24, 0.0 }
  0xc3   : > { %313 = vadd.xlane.f32.xlu1 %v312_v25 }
  0xc9   : > { %302 = vadd.xlane.f32.xlu0 %v301_v27 }
 0x134   : > { %v292_v28 = vpop.xlane.xlu0 %291 }
 0x135   : > { %v293_v29 = vrot.slane %v292_v28, 4 }
 0x136   : > { %v314_v30 = vpop.xlane.xlu1 %313 }
 0x137   : > { %v294_v31 = vadd.f32 %v293_v29, %v292_v28  ;;  %v315_v32 = vrot.slane %v314_v30, 4 }
 0x139   : > { %v295_v33 = vrot.slane %v294_v31, 2  ;;  %v316_v34 = vadd.f32 %v315_v32, %v314_v30 }
 0x13b   : > { %v296_v35 = vadd.f32 %v295_v33, %v294_v31  ;;  %v317_v36 = vrot.slane %v316_v34, 2 }
 0x13c   : > { %v303_v37 = vpop.xlane.xlu0 %302 }
 0x13d   : > { %v304_v38 = vrot.slane %v303_v37, 4  ;;  %v297_v39 = vrot.slane %v296_v35, 1  ;;  %v318_v42 = vadd.f32 %v317_v36, %v316_v34 }
 0x13f   : > { %v305_v40 = vadd.f32 %v304_v38, %v303_v37  ;;  %v298_v41 = vadd.f32 %v297_v39, %v296_v35  ;;  %v319_v45 = vrot.slane %v318_v42, 1 }
 0x141   : > { %v306_v43 = vrot.slane %v305_v40, 2  ;;  %428 = vpush %v298_v41  ;;  %v320_v48 = vadd.f32 %v319_v45, %v318_v42 }
 0x143   : > { %v307_v44 = vadd.f32 %v306_v43, %v305_v40 }
 0x145   : > { %v308_v46 = vrot.slane %v307_v44, 1 }
 0x147   : > { %v309_v47 = vadd.f32 %v308_v46, %v307_v44 }
 0x149   : > { %430 = vpush %v309_v47 }
 0x14a   : > { %432 = vpush %v320_v48 }
 0x172   : > { %s429_s23 = spop %428 }
 0x173   : > { %s322_s28 = smul.f32 -2.0, %s429_s23 }
 0x17a   : > { %s431_s24 = spop %430 }
 0x17b   : > { %s433_s29 = spop %432  ;;  %s325_s5 = smul.f32 0.1, %s431_s24 }
 0x17c   : > { %s323_s30 = smul.f32 0.9, %s433_s29 }
 0x17e   : > { %s324_s11 = sadd.f32 %s323_s30, %s322_s28 }
 0x180   : > { %s326_s13 = sadd.f32 %s325_s5, %s324_s11 }
 0x182   : > { %v327_v49 = vstv %s326_s13 }
 0x183   : > { %328 = vst [vmem:[%s133_s2] sm:$0xff] %v327_v49 }
 0x184   : > { %538 = shalt.err (!%p535_p4)
}
 0x185   : > { %436 = dma.vmem_to_hbm [thread:$0]  (%p640_p11), %s343_s3, 128, %s345_s4, %s330_s10  }
 0x186 PF: > { %s356_s16 = sand.u32 1, %s565_s6   ;;  %p728_p7 = scmp.ge.s32.totalorder %s577_s9, 2 }
 0x187   : > { %s357_s25 = scalar_lea.sflag [#allocation4], %s356_s16 }
 0x188   : > { %p443_p5 = pnand %p728_p7, %p644_p12 }
 0x18a   : > { %p444_p8 = pneg %p443_p5 }
 0x18c   : > { %560 = dma.done.wait (%p444_p8), %s357_s25, 128  }
 0x18d   : > { %562 = vsyncadd (%p444_p8), %s357_s25, 4294967168  ;;  %p14_p10 = scmp.ge.s32.totalorder %s615_s12, 4   ;;  %s729_s6 = smov %s569_s7 }
 0x18e   : > { %s730_s7 = smov %s573_s8  ;;  %s731_s8 = smov %s627_s15 }
 0x18f   : > { %s732_s9 = smov %s615_s12  ;;  %16 = sbr.rel (!%p14_p10) target bundleno = 5 (0x5), region = 69 }
 0x194   :  { %363 = vsyncpa [#allocation3], 1 }
 0x195   :  { %365 = vsyncpa [#allocation3 + $0x1], 1 }
 0x196   :  { %366 = vsyncpa [#allocation4], 1 }
 0x197   :  { %368 = vsyncpa [#allocation4 + $0x1], 1 }

</bundles_post_ra>
